<compile_context>
chip_gen: v5e
topology: v5e:2x2
jax: 0.10.0
libtpu: 0.0.40
codegen_flags: <defaults>
</compile_context>

<pallas_src>
import functools

import jax
import jax.numpy as jnp
from jax.experimental import pallas as pl
from jax.experimental.pallas import tpu as pltpu


_NEG = -1e30  # non-edge sentinel; safe because every row is guaranteed a self-loop.


def _round_up(v, m):
    return (v + m - 1) // m * m


def _pick_row_tile(n, budget_bytes=24 << 20):
    """Destination-row tile TN (multiple of 8) and padded node count Np.

    Budget bounds the double-buffered [TN, Np] f32 alpha tiles so the kernel fits
    the scoped VMEM we request on every TPU generation (incl. v7x's 64 MiB)."""
    n8 = _round_up(n, 8)
    tn = min(n8, 512)
    while tn > 8 and 2 * tn * _round_up(n, tn) * 4 > budget_bytes:
        tn = max(8, _round_up(tn // 2, 8))
    return tn, _round_up(n, tn)


def _attn_agg_kernel(alpha_ref, a_src_ref, h_ref, out_ref):
    """Per destination-row tile: leaky-relu logits -> masked softmax -> attn @ h."""
    # alpha_ref: [TN, Np] f32  (a_dst + edge alpha folded in; _NEG on non-edges)
    # a_src_ref: [1, Np] f32   (resident)
    # h_ref:     [Np, C] bf16  (resident)
    logits = alpha_ref[...] + a_src_ref[...]
    logits = jnp.where(logits > 0, logits, 0.2 * logits)          # leaky_relu(0.2)
    m = jnp.max(logits, axis=-1, keepdims=True)
    p = jnp.exp(logits - m)                                        # non-edges -> 0
    inv = pl.reciprocal(jnp.sum(p, axis=-1, keepdims=True), approx=True)
    attn = (p * inv).astype(jnp.bfloat16)
    out_ref[...] = jnp.dot(attn, h_ref[...], preferred_element_type=jnp.float32)


def _bias_bn_relu_kernel(x_ref, vec_ref, out_ref):
    # x_ref: [N, C] f32; vec_ref: [8, C] packed (row0: conv bias, 1: gamma, 2: beta)
    xb = x_ref[...] + vec_ref[0:1, :]
    mean = jnp.mean(xb, axis=0, keepdims=True)
    var = jnp.mean((xb - mean) ** 2, axis=0, keepdims=True)        # biased (training)
    xhat = (xb - mean) * jax.lax.rsqrt(var + 1e-5)
    y = xhat * vec_ref[1:2, :] + vec_ref[2:3, :]
    out_ref[...] = jnp.maximum(y, 0.0)                             # ReLU


def custom_gat_layer(params, x, edge_index, edge_attr, batch):
    N = x.shape[0]
    De = edge_attr.shape[1]
    C = params["w_src"].shape[1]

    src = edge_index[0]
    dst = edge_index[1]
    valid = src != dst   # GATConv removes existing self-loops before re-adding them

    # ---- cheap XLA glue: small matvecs + data-dependent scatter ---------------
    h = jnp.dot(x, params["w_src"])                                # [N, C]
    a_src = jnp.dot(h, params["att_src"].T)                        # [N, 1]
    a_dst = jnp.dot(h, params["att_dst"].T)                        # [N, 1]

    # edge alpha identity: sum((e @ We) * a_e, -1) == e @ (We @ a_e.T)
    we_att = jnp.dot(params["w_edge"], params["att_edge"].T)       # [De, 1]
    alpha_e = jnp.dot(edge_attr, we_att)[:, 0]                     # [E]

    # self-loop attr (fill_value='mean'): mean of incoming non-self edge attrs
    ea_masked = jnp.where(valid[:, None], edge_attr, 0.0)
    sums = jnp.zeros((N, De), jnp.float32).at[dst].add(ea_masked)
    counts = jnp.zeros((N,), jnp.float32).at[dst].add(valid.astype(jnp.float32))
    loop_attr = sums / jnp.maximum(counts, 1.0)[:, None]           # [N, De]
    loop_alpha = jnp.dot(loop_attr, we_att)[:, 0]                  # [N]

    TN, Np = _pick_row_tile(N)
    diag = jnp.arange(N)

    # Dense pre-logits with mask and a_dst folded in; _NEG marks "no edge".
    # TODO(synk): duplicate (src, dst) pairs keep only the last edge's alpha in the
    # dense scatter; PyG would include every parallel edge in the softmax.
    edge_vals = jnp.where(valid, alpha_e + a_dst[dst, 0], _NEG)
    alpha_dense = jnp.full((Np, Np), _NEG, jnp.float32)
    alpha_dense = alpha_dense.at[dst, src].set(edge_vals)
    alpha_dense = alpha_dense.at[diag, diag].set(loop_alpha + a_dst[:, 0])

    a_src_row = jnp.zeros((1, Np), jnp.float32).at[:, :N].set(a_src.T)
    h_bf16 = jnp.zeros((Np, C), jnp.bfloat16).at[:N].set(h.astype(jnp.bfloat16))

    agg = pl.pallas_call(
        _attn_agg_kernel,
        out_shape=jax.ShapeDtypeStruct((Np, C), jnp.float32),
        grid=(Np // TN,),
        in_specs=[
            pl.BlockSpec((TN, Np), lambda i: (i, 0)),   # alpha tiles (pipelined)
            pl.BlockSpec((1, Np), lambda i: (0, 0)),    # a_src row (resident)
            pl.BlockSpec((Np, C), lambda i: (0, 0)),    # h, bf16 (resident)
        ],
        out_specs=pl.BlockSpec((TN, C), lambda i: (i, 0)),
        compiler_params=pltpu.CompilerParams(
            dimension_semantics=("parallel",),
            vmem_limit_bytes=48 * 1024 * 1024,
        ),
    )(alpha_dense, a_src_row, h_bf16)

    agg = agg[:N]   # drop padded destination rows before batch statistics

    # conv bias + BN affine packed into one (8, C) operand (single DMA)
    vecs = jnp.concatenate(
        [params["bias"], params["gamma"], params["beta"],
         jnp.zeros((5, C), jnp.float32)], axis=0)

    out = pl.pallas_call(
        _bias_bn_relu_kernel,
        out_shape=jax.ShapeDtypeStruct((N, C), jnp.float32),
        in_specs=[pl.BlockSpec(memory_space=pltpu.MemorySpace.VMEM),
                  pl.BlockSpec(memory_space=pltpu.MemorySpace.VMEM)],
        out_specs=pl.BlockSpec(memory_space=pltpu.MemorySpace.VMEM),
    )(agg, vecs)

    return out, edge_index, edge_attr, batch


def init_params(key, input_dim, hidden_dim, edge_dim):
    k1, k2, k3, k4, k5 = jax.random.split(key, 5)
    s = 0.1
    return dict(
        w_src=jax.random.normal(k1, (input_dim, hidden_dim), jnp.float32) * s,
        w_edge=jax.random.normal(k2, (edge_dim, hidden_dim), jnp.float32) * s,
        att_src=jax.random.normal(k3, (1, hidden_dim), jnp.float32) * s,
        att_dst=jax.random.normal(k4, (1, hidden_dim), jnp.float32) * s,
        att_edge=jax.random.normal(k5, (1, hidden_dim), jnp.float32) * s,
        bias=jnp.zeros((1, hidden_dim), jnp.float32),   # GATConv bias init = 0
        gamma=jnp.ones((1, hidden_dim), jnp.float32),   # BatchNorm1d weight
        beta=jnp.zeros((1, hidden_dim), jnp.float32),   # BatchNorm1d bias
    )


if __name__ == "__main__":
    key = jax.random.PRNGKey(0)
    kx, ke, kp = jax.random.split(key, 3)

    N, Fin, C, De, E = 16, 8, 32, 4, 32
    x = jax.random.normal(kx, (N, Fin), jnp.float32)
    edge_attr = jax.random.normal(ke, (E, De), jnp.float32)

    # deterministic edge list, no duplicate (src, dst) pairs; include one self loop
    i = jnp.arange(E)
    src = i % N
    dst = (src + 1 + (i // N) * 3) % N
    dst = dst.at[0].set(src[0])
    edge_index = jnp.stack([src, dst]).astype(jnp.int32)
    batch = (jnp.arange(N) // (N // 2)).astype(jnp.int32)   # 2 graphs of 8 nodes

    params = init_params(kp, Fin, C, De)

    fn = jax.jit(functools.partial(custom_gat_layer, params))
    out, ei, ea, b = fn(x, edge_index, edge_attr, batch)
    jax.block_until_ready(out)

    assert out.shape == (N, C) and out.dtype == jnp.float32
    assert bool(jnp.all(out >= 0.0))          # ReLU output
    assert bool(jnp.all(jnp.isfinite(out)))
    print("KERNEL_OK")
</pallas_src>

<mosaic_0001>
module attributes {stable_mosaic.version = 11 : i64} {
  func.func @_attn_agg_kernel(%arg0: i32, %arg1: memref<16x16xf32, #tpu.memory_space<vmem>>, %arg2: memref<1x16xf32, #tpu.memory_space<vmem>>, %arg3: memref<16x32xbf16, #tpu.memory_space<vmem>>, %arg4: memref<16x32xf32, #tpu.memory_space<vmem>>) attributes {dimension_semantics = [#tpu.dimension_semantics<parallel>], iteration_bounds = array<i64: 1>, scalar_prefetch = 0 : i64, scratch_operands = 0 : i64, tpu.core_type = #tpu.core_type<tc>, window_params = [{transform_indices = @transform_0, window_bounds = array<i64: 16, 16>}, {pipeline_mode = #tpu.pipeline_mode<synchronous>, transform_indices = @transform_1, window_bounds = array<i64: 1, 16>}, {pipeline_mode = #tpu.pipeline_mode<synchronous>, transform_indices = @transform_2, window_bounds = array<i64: 16, 32>}, {transform_indices = @transform_3, window_bounds = array<i64: 16, 32>}]} {
    %c0 = arith.constant 0 : index
    %c0_0 = arith.constant 0 : index
    %0 = vector.load %arg1[%c0, %c0_0] : memref<16x16xf32, #tpu.memory_space<vmem>>, vector<16x16xf32>
    %c0_1 = arith.constant 0 : index
    %c0_2 = arith.constant 0 : index
    %1 = vector.load %arg2[%c0_1, %c0_2] : memref<1x16xf32, #tpu.memory_space<vmem>>, vector<1x16xf32>
    %2 = vector.broadcast %1 : vector<1x16xf32> to vector<16x16xf32>
    %3 = arith.addf %0, %2 : vector<16x16xf32>
    %cst = arith.constant 0.000000e+00 : f32
    %4 = vector.broadcast %cst : f32 to vector<16x16xf32>
    %5 = arith.cmpf ogt, %3, %4 : vector<16x16xf32>
    %cst_3 = arith.constant 2.000000e-01 : f32
    %6 = vector.broadcast %cst_3 : f32 to vector<16x16xf32>
    %7 = arith.mulf %6, %3 : vector<16x16xf32>
    %8 = arith.select %5, %3, %7 : vector<16x16xi1>, vector<16x16xf32>
    %cst_4 = arith.constant dense<0xFF800000> : vector<16xf32>
    %9 = vector.multi_reduction <maximumf>, %8, %cst_4 [1] : vector<16x16xf32> to vector<16xf32>
    %10 = vector.shape_cast %9 : vector<16xf32> to vector<16x1xf32>
    %11 = vector.broadcast %10 : vector<16x1xf32> to vector<16x16xf32>
    %12 = arith.subf %8, %11 : vector<16x16xf32>
    %13 = math.exp %12 : vector<16x16xf32>
    %cst_5 = arith.constant dense<0.000000e+00> : vector<16xf32>
    %14 = vector.multi_reduction <add>, %13, %cst_5 [1] : vector<16x16xf32> to vector<16xf32>
    %15 = vector.shape_cast %14 : vector<16xf32> to vector<16x1xf32>
    %16 = tpu.reciprocal %15 {approx = true} : vector<16x1xf32> -> vector<16x1xf32>
    %17 = vector.broadcast %16 : vector<16x1xf32> to vector<16x16xf32>
    %18 = arith.mulf %13, %17 : vector<16x16xf32>
    %19 = arith.truncf %18 : vector<16x16xf32> to vector<16x16xbf16>
    %c0_6 = arith.constant 0 : index
    %c0_7 = arith.constant 0 : index
    %20 = vector.load %arg3[%c0_6, %c0_7] : memref<16x32xbf16, #tpu.memory_space<vmem>>, vector<16x32xbf16>
    %cst_8 = arith.constant dense<0.000000e+00> : vector<16x32xf32>
    %21 = tpu.matmul %19, %20, %cst_8 {dimension_numbers = #tpu.dot_dimension_numbers<[1], [0], [0], [1], [0, 0, 1, 1], [], []>} : vector<16x16xbf16>, vector<16x32xbf16>, vector<16x32xf32> -> vector<16x32xf32>
    %c0_9 = arith.constant 0 : index
    %c0_10 = arith.constant 0 : index
    %22 = vector.load %arg4[%c0_9, %c0_10] : memref<16x32xf32, #tpu.memory_space<vmem>>, vector<16x32xf32>
    tpu.vector_store %arg4[%c0_9, %c0_10], %21 {strides = array<i32>} : memref<16x32xf32, #tpu.memory_space<vmem>>, vector<16x32xf32>,
    return
  }
  func.func @transform_0(%arg0: i32) -> (i32, i32) {
    %c0_i32 = arith.constant 0 : i32
    %c0_i32_0 = arith.constant 0 : i32
    return %arg0, %c0_i32 : i32, i32
  }
  func.func @transform_1(%arg0: i32) -> (i32, i32) {
    %c0_i32 = arith.constant 0 : i32
    %c0_i32_0 = arith.constant 0 : i32
    %c0_i32_1 = arith.constant 0 : i32
    return %c0_i32, %c0_i32_0 : i32, i32
  }
  func.func @transform_2(%arg0: i32) -> (i32, i32) {
    %c0_i32 = arith.constant 0 : i32
    %c0_i32_0 = arith.constant 0 : i32
    %c0_i32_1 = arith.constant 0 : i32
    return %c0_i32, %c0_i32_0 : i32, i32
  }
  func.func @transform_3(%arg0: i32) -> (i32, i32) {
    %c0_i32 = arith.constant 0 : i32
    %c0_i32_0 = arith.constant 0 : i32
    return %arg0, %c0_i32 : i32, i32
  }
}

module attributes {stable_mosaic.version = 11 : i64} {
  func.func @_bias_bn_relu_kernel(%arg0: memref<16x32xf32, #tpu.memory_space<vmem>>, %arg1: memref<8x32xf32, #tpu.memory_space<vmem>>, %arg2: memref<16x32xf32, #tpu.memory_space<vmem>>) attributes {dimension_semantics = [], scalar_prefetch = 0 : i64, scratch_operands = 0 : i64, tpu.core_type = #tpu.core_type<tc>} {
    %c0 = arith.constant 0 : index
    %c0_0 = arith.constant 0 : index
    %0 = vector.load %arg0[%c0, %c0_0] : memref<16x32xf32, #tpu.memory_space<vmem>>, vector<16x32xf32>
    %c0_1 = arith.constant 0 : index
    %c0_2 = arith.constant 0 : index
    %1 = vector.load %arg1[%c0_1, %c0_2] : memref<8x32xf32, #tpu.memory_space<vmem>>, vector<1x32xf32>
    %2 = vector.broadcast %1 : vector<1x32xf32> to vector<16x32xf32>
    %3 = arith.addf %0, %2 : vector<16x32xf32>
    %cst = arith.constant dense<0.000000e+00> : vector<32xf32>
    %4 = vector.multi_reduction <add>, %3, %cst [0] : vector<16x32xf32> to vector<32xf32>
    %5 = vector.shape_cast %4 : vector<32xf32> to vector<1x32xf32>
    %cst_3 = arith.constant 1.600000e+01 : f32
    %6 = vector.broadcast %cst_3 : f32 to vector<1x32xf32>
    %7 = arith.divf %5, %6 : vector<1x32xf32>
    %8 = vector.broadcast %7 : vector<1x32xf32> to vector<16x32xf32>
    %9 = arith.subf %3, %8 : vector<16x32xf32>
    %10 = arith.mulf %9, %9 : vector<16x32xf32>
    %cst_4 = arith.constant dense<0.000000e+00> : vector<32xf32>
    %11 = vector.multi_reduction <add>, %10, %cst_4 [0] : vector<16x32xf32> to vector<32xf32>
    %12 = vector.shape_cast %11 : vector<32xf32> to vector<1x32xf32>
    %cst_5 = arith.constant 1.600000e+01 : f32
    %13 = vector.broadcast %cst_5 : f32 to vector<1x32xf32>
    %14 = arith.divf %12, %13 : vector<1x32xf32>
    %15 = vector.broadcast %7 : vector<1x32xf32> to vector<16x32xf32>
    %16 = arith.subf %3, %15 : vector<16x32xf32>
    %cst_6 = arith.constant 9.99999974E-6 : f32
    %17 = vector.broadcast %cst_6 : f32 to vector<1x32xf32>
    %18 = arith.addf %14, %17 : vector<1x32xf32>
    %19 = math.rsqrt %18 : vector<1x32xf32>
    %20 = vector.broadcast %19 : vector<1x32xf32> to vector<16x32xf32>
    %21 = arith.mulf %16, %20 : vector<16x32xf32>
    %c1 = arith.constant 1 : index
    %c0_7 = arith.constant 0 : index
    %22 = vector.load %arg1[%c1, %c0_7] : memref<8x32xf32, #tpu.memory_space<vmem>>, vector<1x32xf32>
    %23 = vector.broadcast %22 : vector<1x32xf32> to vector<16x32xf32>
    %24 = arith.mulf %21, %23 : vector<16x32xf32>
    %c2 = arith.constant 2 : index
    %c0_8 = arith.constant 0 : index
    %25 = vector.load %arg1[%c2, %c0_8] : memref<8x32xf32, #tpu.memory_space<vmem>>, vector<1x32xf32>
    %26 = vector.broadcast %25 : vector<1x32xf32> to vector<16x32xf32>
    %27 = arith.addf %24, %26 : vector<16x32xf32>
    %cst_9 = arith.constant 0.000000e+00 : f32
    %28 = vector.broadcast %cst_9 : f32 to vector<16x32xf32>
    %29 = arith.maximumf %27, %28 : vector<16x32xf32>
    %c0_10 = arith.constant 0 : index
    %c0_11 = arith.constant 0 : index
    %30 = vector.load %arg2[%c0_10, %c0_11] : memref<16x32xf32, #tpu.memory_space<vmem>>, vector<16x32xf32>
    tpu.vector_store %arg2[%c0_10, %c0_11], %29 {strides = array<i32>} : memref<16x32xf32, #tpu.memory_space<vmem>>, vector<16x32xf32>,
    return
  }
}

</mosaic_0001>

<bundles_post_ra>
// kernel: custom_gat_layer.3
= control target key start
LH: loop header
LB: loop body
LE: loop exit
PB: predicated region body
PF: predicated region fallthrough
CT: control target
= control target key end

     0   :  { %v130_v3 = vmov 16.0   ;;  %vm18_vm0 = vcmask 261120   ;;  %s173_s0 = inlined_call_operand.vmem [shape: f32[16,32], index: 0, kind: input, shape index: {}]   ;;  %s174_s1 = inlined_call_operand.vmem [shape: f32[8,32], index: 1, kind: input, shape index: {}]   ;;  %s175_s2 = inlined_call_operand.hbm [shape: f32[16,32], index: 2, kind: output, shape index: {}]  }
   0x1   :  { %v12_v0 = vld [vmem:[%s173_s0] sm:$0xff]  ;;  %v13_v1 = vld [vmem:[%s173_s0 + $0x8] sm:$0xff]  ;;  %100 = vrcp.f32 %v130_v3 }
   0x2   :  { %v97_v2 = vld [vmem:[%s174_s1] ss:$0 sm:$0xff] }
   0x3   :  { %7 = vsyncpa [#allocation3], 0  ;;  %v16_v4 = vadd.f32 %v97_v2, %v12_v0  ;;  %v17_v5 = vadd.f32 %v97_v2, %v13_v1  ;;  %v98_v43 = vld [vmem:[%s174_s1 + $0x1] ss:$0 sm:$0xff]  ;;  %v99_v46 = vld [vmem:[%s174_s1 + $0x2] ss:$0 sm:$0xff] }
   0x4   :  { %s131_s18 = smov [#allocation2]   ;;  %s81_s22 = sshll.u32 %s175_s2, 4  ;;  %s82_s22 = int_to_ptr.hbm [resolvable:$true] %s81_s22 }
   0x5   :  { %v19_v6 = vsel %vm18_vm0, %v16_v4, 0.0  ;;  %v20_v7 = vsel %vm18_vm0, %v17_v5, 0.0  ;;  %s79_s19 = sshll.u32 %s131_s18, 4  ;;  %s132_s1 = smov 128   ;;  %s80_s19 = int_to_ptr.vmem [resolvable:$true] %s79_s19 }
   0x6   :  { %v21_v8 = vadd.f32 %v20_v7, %v19_v6  ;;  %s133_s23 = smov 8  }
   0x7   :  { %v101_v9 = vpop.eup %100 }
   0x8   :  { %v22_v10 = vrot.slane %v21_v8, 4  ;;  %v29_v11 = vmul.f32 16.0, %v101_v9  ;;  %vm33_vm1 = vweird.f32 %v101_v9 }
   0xa   :  { %v23_v12 = vadd.f32 %v22_v10, %v21_v8  ;;  %v30_v13 = vsub.f32 1.0, %v29_v11 }
   0xc   :  { %v24_v14 = vrot.slane %v23_v12, 2  ;;  %v31_v15 = vmul.f32 %v101_v9, %v30_v13 }
   0xe   :  { %v25_v16 = vadd.f32 %v24_v14, %v23_v12  ;;  %v32_v17 = vadd.f32 %v101_v9, %v31_v15 }
  0x10   :  { %v26_v18 = vrot.slane %v25_v16, 1  ;;  %v34_v19 = vsel %vm33_vm1, %v101_v9, %v32_v17 }
  0x12   :  { %v27_v20 = vadd.f32 %v26_v18, %v25_v16 }
  0x14   :  { %v35_v21 = vmul.f32 %v34_v19, %v27_v20 }
  0x16   :  { %v36_v22 = vsub.f32 %v16_v4, %v35_v21  ;;  %v37_v23 = vsub.f32 %v17_v5, %v35_v21 }
  0x18   :  { %v38_v24 = vmul.f32 %v36_v22, %v36_v22  ;;  %v39_v25 = vmul.f32 %v37_v23, %v37_v23 }
  0x1a   :  { %v40_v26 = vsel %vm18_vm0, %v38_v24, 0.0  ;;  %v41_v27 = vsel %vm18_vm0, %v39_v25, 0.0 }
  0x1b   :  { %v42_v28 = vadd.f32 %v41_v27, %v40_v26 }
  0x1d   :  { %v43_v29 = vrot.slane %v42_v28, 4 }
  0x1f   :  { %v44_v30 = vadd.f32 %v43_v29, %v42_v28 }
  0x21   :  { %v45_v31 = vrot.slane %v44_v30, 2 }
  0x23   :  { %v46_v32 = vadd.f32 %v45_v31, %v44_v30 }
  0x25   :  { %v47_v33 = vrot.slane %v46_v32, 1 }
  0x27   :  { %v48_v34 = vadd.f32 %v47_v33, %v46_v32 }
  0x29   :  { %v49_v35 = vmul.f32 %v48_v34, %v34_v19 }
  0x2b   :  { %v50_v36 = vadd.f32 1e-05, %v49_v35 }
  0x2d   :  { %102 = vrsqrt.f32 %v50_v36  ;;  %vm57_vm2 = vweird.f32 %v50_v36 }
  0x33   :  { %v103_v37 = vpop.eup %102 }
  0x34   :  { %v52_v38 = vmul.f32 %v103_v37, %v50_v36  ;;  %vm58_vm3 = vweird.f32 %v103_v37 }
  0x35   :  { %vm59_vm4 = vmor %vm57_vm2, %vm58_vm3 }
  0x36   :  { %v53_v39 = vmul.f32 %v103_v37, %v52_v38 }
  0x38   :  { %v54_v40 = vmul.f32 0.5, %v53_v39 }
  0x3a   :  { %v55_v41 = vsub.f32 1.5, %v54_v40 }
  0x3c   :  { %v56_v42 = vmul.f32 %v103_v37, %v55_v41 }
  0x3e   :  { %v60_v44 = vsel %vm59_vm4, %v103_v37, %v56_v42 }
  0x3f   :  { %v61_v45 = vmul.f32 %v60_v44, %v36_v22  ;;  %v62_v47 = vmul.f32 %v60_v44, %v37_v23 }
  0x41   :  { %v65_v48 = vmul.f32 %v98_v43, %v61_v45  ;;  %v66_v49 = vmul.f32 %v98_v43, %v62_v47 }
  0x43   :  { %v69_v50 = vadd.f32 %v99_v46, %v65_v48  ;;  %v70_v51 = vadd.f32 %v99_v46, %v66_v49 }
  0x45   :  { %v71_v52 = vmax.f32 %v69_v50, 0.0  ;;  %v72_v53 = vmax.f32 %v70_v51, 0.0 }
  0x47   :  { %73 = vst.msk [vmem:[#allocation2] sm:$0xff] %vm18_vm0, %v71_v52 }
  0x48   :  { %74 = vst.msk [vmem:[#allocation2 + $0x8] sm:$0xff] %vm18_vm0, %v72_v53 }
  0x49   :  { %87 = dma.vmem_to_hbm [thread:$0]  %s80_s19, 256, %s82_s22, [#allocation3], %s132_s1, %s132_s1, %s133_s23  }
  0x4a   :  { %128 = dma.done.wait [#allocation3], 256  }
  0x4b   :  { %129 = vsyncadd [#allocation3], 4294967040 }
  0x4c   :  { %92 = vsyncpa [#allocation3], 1 }

// kernel: custom_gat_layer.2
= control target key start
LH: loop header
LB: loop body
LE: loop exit
PB: predicated region body
PF: predicated region fallthrough
CT: control target
= control target key end

     0   :  { %vm29_vm1 = vcmask 130048   ;;  %vm78_vm3 = vcmask 261120   ;;  %s143_s0 = inlined_call_operand.vmem [shape: f32[16,16], index: 0, kind: input, shape index: {}]   ;;  %s144_s1 = inlined_call_operand.vmem [shape: f32[1,16], index: 1, kind: input, shape index: {}]   ;;  %s145_s2 = inlined_call_operand.vmem [shape: bf16[16,32], index: 2, kind: input, shape index: {}]   ;;  %s146_s3 = inlined_call_operand.vmem [shape: f32[16,32], index: 3, kind: output, shape index: {}]  }
   0x1   :  { %v15_v0 = vld [vmem:[%s143_s0] sm:$0xff]  ;;  %v16_v2 = vld [vmem:[%s143_s0 + $0x8] sm:$0xff] }
   0x2   :  { %v91_v1 = vld [vmem:[%s144_s1] ss:$0 sm:$0xff] }
   0x3   :  { %v21_v3 = vadd.f32 %v91_v1, %v15_v0  ;;  %v22_v4 = vadd.f32 %v91_v1, %v16_v2  ;;  %v90_v21 = vld [vmem:[%s145_s2] sm:$0xff] }
   0x4   :  { %71 = vmatpush.bf16.msra.mxu0 %v90_v21 }
   0x5   :  { %vm23_vm0 = vcmp.gt.f32.partialorder %v21_v3, 0.0  ;;  %v25_v5 = vmul.f32 0.2, %v21_v3  ;;  %v26_v7 = vmul.f32 0.2, %v22_v4  ;;  %vm24_vm2 = vcmp.gt.f32.partialorder %v22_v4, 0.0 }
   0x7   :  { %v27_v6 = vsel %vm23_vm0, %v21_v3, %v25_v5  ;;  %v28_v9 = vsel %vm24_vm2, %v22_v4, %v26_v7 }
   0x8   :  { %v30_v8 = vsel %vm29_vm1, %v27_v6, -inf  ;;  %v33_v10 = vsel %vm29_vm1, %v28_v9, -inf }
   0x9   :  { %31 = vmax.xlane.f32.xlu0 %v30_v8 }
  0x11   :  { %34 = vmax.xlane.f32.xlu0 %v33_v10 }
  0x7c   :  { %v32_v11 = vpop.xlane.xlu0 %31 }
  0x7d   :  { %v36_v12 = vsub.f32 %v27_v6, %v32_v11 }
  0x7f   :  { %v38_v13 = vmul.f32 1.442695, %v36_v12 }
  0x81   :  { %92 = vpow2.f32 %v38_v13 }
  0x84   :  { %v35_v14 = vpop.xlane.xlu0 %34 }
  0x85   :  { %v37_v15 = vsub.f32 %v28_v9, %v35_v14 }
  0x87   :  { %v93_v16 = vpop.eup %92  ;;  %v40_v17 = vmul.f32 1.442695, %v37_v15 }
  0x88   :  { %v42_v18 = vsel %vm29_vm1, %v93_v16, 0.0 }
  0x89   :  { %94 = vpow2.f32 %v40_v17  ;;  %43 = vadd.xlane.f32.xlu1 %v42_v18 }
  0x8f   :  { %v95_v19 = vpop.eup %94 }
  0x90   :  { %v45_v20 = vsel %vm29_vm1, %v95_v19, 0.0 }
  0x91   :  { %46 = vadd.xlane.f32.xlu1 %v45_v20 }
  0xfc   :  { %v44_v22 = vpop.xlane.xlu1 %43 }
  0xfd   :  { %96 = vrcp.f32 %v44_v22 }
 0x103   :  { %v97_v24 = vpop.eup %96 }
 0x104   :  { %v47_v23 = vpop.xlane.xlu1 %46  ;;  %v50_v26 = vmul.f32 %v97_v24, %v93_v16 }
 0x105   :  { %98 = vrcp.f32 %v47_v23 }
 0x10b   :  { %v99_v25 = vpop.eup %98 }
 0x10c   :  { %v51_v27 = vmul.f32 %v99_v25, %v95_v19 }
 0x10e   :  { %v52_v28 = vpack.c.bf16 %v51_v27, %v50_v26 }
 0x110   :  { %89 = vmatmul.msk.bf16.vlgmr.msra.gmra.mxu0 %vm29_vm1, %v52_v28 }
 0x18d   :  { %v73_v29 = vpop.f32.mrf.mxu0 }
 0x18e   :  { %79 = vst.msk [vmem:[%s146_s3] sm:$0xff] %vm78_vm3, %v73_v29 }
 0x195   :  { %v75_v30 = vpop.f32.mrf.mxu0 }
 0x196   :  { %80 = vst.msk [vmem:[%s146_s3 + $0x8] sm:$0xff] %vm78_vm3, %v75_v30 }

</bundles_post_ra>
